<compile_context>
chip_gen: v7x
topology: tpu7x:2x2x1
jax: 0.10.0
libtpu: 0.0.40
codegen_flags: <defaults>
</compile_context>

<pallas_src>
import math
from functools import partial

import jax
import jax.numpy as jnp
from jax import lax
from jax.experimental import pallas as pl
from jax.experimental.pallas import tpu as pltpu


# ------------------------- fused patch-merge + LayerNorm + Linear ------------------------
def _merge_ln_linear_kernel(x_ref, g_ref, b_ref, w_ref, o_ref, *, eps, inv_c4):
    # x_ref: (TBH, 2, W2, 2C)  even/odd row pairs, channels in "natural" gather order
    # g_ref/b_ref: (2, 1, 1, 2C)  permuted LayerNorm affine, split into even/odd halves
    # w_ref: (2, 2C, N)            permuted (transposed) reduction weight, split likewise
    # o_ref: (TBH, W2, N)
    xe = x_ref[:, 0, :, :]                       # (TBH, W2, 2C)  channels [x0 | x2]
    xo = x_ref[:, 1, :, :]                       # (TBH, W2, 2C)  channels [x1 | x3]

    # LayerNorm statistics over the merged 4C channels (accumulated across both halves).
    mean = (jnp.sum(xe, axis=-1, keepdims=True)
            + jnp.sum(xo, axis=-1, keepdims=True)) * inv_c4
    xec = xe - mean
    xoc = xo - mean
    var = (jnp.sum(xec * xec, axis=-1, keepdims=True)
           + jnp.sum(xoc * xoc, axis=-1, keepdims=True)) * inv_c4
    inv = lax.rsqrt(var + eps)                   # eps inside rsqrt (matches nn.LayerNorm)

    he = xec * inv * g_ref[0] + b_ref[0]         # affine, even-row half
    ho = xoc * inv * g_ref[1] + b_ref[1]         # affine, odd-row half

    tbh, w2, c2 = he.shape
    n = w_ref.shape[-1]
    # Split-K reduction linear on the MXU, f32 accumulation:
    #   out = he @ W_even + ho @ W_odd  ==  LayerNorm(x_merged) @ W^T  (bias-free)
    acc = jnp.dot(he.reshape(tbh * w2, c2), w_ref[0],
                  preferred_element_type=jnp.float32)
    acc = acc + jnp.dot(ho.reshape(tbh * w2, c2), w_ref[1],
                        preferred_element_type=jnp.float32)
    o_ref[...] = acc.reshape(tbh, w2, n).astype(o_ref.dtype)


def pack_kernel_params(norm_gamma, norm_beta, redu_weight):
    """Fold PyTorch's [x0,x1,x2,x3] channel-concat order into the parameters.

    The kernel reads channels in memory-natural order [x0,x2 | x1,x3]; permuting the
    affine params and the rows of W^T accordingly makes the result bit-for-bit the same
    linear map (LN stats are permutation-invariant over the channel axis).
    """
    c4 = norm_gamma.shape[0]
    c = c4 // 4
    c2 = 2 * c
    perm = jnp.concatenate([jnp.arange(0, c), jnp.arange(2 * c, 3 * c),
                            jnp.arange(c, 2 * c), jnp.arange(3 * c, 4 * c)])
    w_t = jnp.transpose(redu_weight)[perm]            # (4C, N), rows in natural order
    n = w_t.shape[1]
    return dict(
        gamma=norm_gamma[perm].reshape(2, 1, 1, c2).astype(jnp.float32),
        beta=norm_beta[perm].reshape(2, 1, 1, c2).astype(jnp.float32),
        w=w_t.reshape(2, c2, n).astype(jnp.float32),
    )


def patch_merging_forward(x, kparams, *, eps=1e-5, target_rows=1024):
    B, H, W, C = x.shape
    H2, W2 = H // 2, W // 2
    if (H % 2) or (W % 2):
        # SHAPE_FIX crop for odd spatial dims (copy only in this already-warned path).
        # TODO(synk): the PyTorch runtime warning print has no kernel-side equivalent.
        x = x[:, :2 * H2, :2 * W2, :]

    C2, C4 = 2 * C, 4 * C
    N = kparams["w"].shape[-1]
    BH = B * H2

    # Free metadata reshape: (B, 2*H2, 2*W2, C) -> (B*H2, 2, W2, 2C).  No HBM traffic.
    x5 = x.reshape(BH, 2, W2, C2)

    # Row-pair tile: ~target_rows merged rows (tbh * W2) per grid step, byte-capped so the
    # double-buffered blocks fit every generation's VMEM, snapped to a divisor of BH so no
    # padding / remainder masking is needed.  (For large inputs this naturally yields >=2
    # grid steps, letting v7x shard the 'parallel' axis across both TensorCores.)
    itemsize = x.dtype.itemsize
    bytes_per_rowpair = (2 * W2 * C2 + W2 * N) * itemsize
    tbh_cap = max(1, (8 << 20) // max(1, bytes_per_rowpair))
    tbh_target = max(1, min(BH, -(-target_rows // W2), tbh_cap))
    tbh = max(d for d in range(1, tbh_target + 1) if BH % d == 0)
    grid = (BH // tbh,)

    in_block = tbh * 2 * W2 * C2 * itemsize
    out_block = tbh * W2 * N * itemsize
    param_bytes = (2 * C2 * 2 + 2 * C2 * N) * 4
    vmem_need = 2 * (in_block + out_block) + 2 * param_bytes + (4 << 20)
    vmem_limit = int(min(96 << 20, max(32 << 20, vmem_need)))

    out = pl.pallas_call(
        partial(_merge_ln_linear_kernel, eps=eps, inv_c4=1.0 / C4),
        out_shape=jax.ShapeDtypeStruct((BH, W2, N), jnp.float32),
        grid=grid,
        in_specs=[
            pl.BlockSpec((tbh, 2, W2, C2), lambda i: (i, 0, 0, 0)),   # row-pair tile
            pl.BlockSpec((2, 1, 1, C2), lambda i: (0, 0, 0, 0)),      # gamma (resident)
            pl.BlockSpec((2, 1, 1, C2), lambda i: (0, 0, 0, 0)),      # beta  (resident)
            pl.BlockSpec((2, C2, N), lambda i: (0, 0, 0)),            # W^T   (resident)
        ],
        out_specs=pl.BlockSpec((tbh, W2, N), lambda i: (i, 0, 0)),
        compiler_params=pltpu.CompilerParams(
            dimension_semantics=("parallel",),
            vmem_limit_bytes=vmem_limit,
        ),
    )(x5, kparams["gamma"], kparams["beta"], kparams["w"])

    return out.reshape(B, H2, W2, N)


# -------------------------------------- reference ---------------------------------------
def _reference_forward(x, gamma, beta, redu_weight, eps=1e-5):
    B, H, W, C = x.shape
    H2, W2 = H // 2, W // 2
    x0 = x[:, 0::2, 0::2, :][:, :H2, :W2, :]
    x1 = x[:, 1::2, 0::2, :][:, :H2, :W2, :]
    x2 = x[:, 0::2, 1::2, :][:, :H2, :W2, :]
    x3 = x[:, 1::2, 1::2, :][:, :H2, :W2, :]
    xm = jnp.concatenate([x0, x1, x2, x3], axis=-1)
    mean = jnp.mean(xm, axis=-1, keepdims=True)
    var = jnp.mean((xm - mean) ** 2, axis=-1, keepdims=True)
    xn = (xm - mean) * lax.rsqrt(var + eps)
    xn = xn * gamma + beta
    return jnp.einsum("bhwk,nk->bhwn", xn, redu_weight,
                      precision=lax.Precision.HIGHEST)


# --------------------------------------- self test ---------------------------------------
if __name__ == "__main__":
    DIM = 32                                                  # module `dim`
    key = jax.random.PRNGKey(0)
    pkey, xkey = jax.random.split(key)

    # nn.LayerNorm(4*dim) fresh init + nn.Linear(4*dim, 2*dim, bias=False) uniform init.
    gamma = jnp.ones((4 * DIM,), jnp.float32)
    beta = jnp.zeros((4 * DIM,), jnp.float32)
    bound = 1.0 / math.sqrt(4 * DIM)
    redu_w = jax.random.uniform(pkey, (2 * DIM, 4 * DIM), jnp.float32, -bound, bound)
    kparams = pack_kernel_params(gamma, beta, redu_w)

    x = jax.random.normal(xkey, (2, 16, 16, DIM), jnp.float32)   # (B, H, W, C)

    fwd = jax.jit(patch_merging_forward)
    out = jax.block_until_ready(fwd(x, kparams))

    ref = _reference_forward(x, gamma, beta, redu_w)
    assert out.shape == (2, 8, 8, 2 * DIM), out.shape
    assert bool(jnp.all(jnp.isfinite(out)))
    assert bool(jnp.allclose(out, ref, rtol=2e-3, atol=2e-3)), \
        float(jnp.max(jnp.abs(out - ref)))
    print("KERNEL_OK")
</pallas_src>

<mosaic_0001>
module attributes {stable_mosaic.version = 11 : i64} {
  func.func @_merge_ln_linear_kernel(%arg0: i32, %arg1: memref<16x2x8x64xf32, #tpu.memory_space<vmem>>, %arg2: memref<2x1x1x64xf32, #tpu.memory_space<vmem>>, %arg3: memref<2x1x1x64xf32, #tpu.memory_space<vmem>>, %arg4: memref<2x64x64xf32, #tpu.memory_space<vmem>>, %arg5: memref<16x8x64xf32, #tpu.memory_space<vmem>>) attributes {dimension_semantics = [#tpu.dimension_semantics<parallel>], iteration_bounds = array<i64: 1>, scalar_prefetch = 0 : i64, scratch_operands = 0 : i64, tpu.core_type = #tpu.core_type<tc>, window_params = [{transform_indices = @transform_0, window_bounds = array<i64: 16, 2, 8, 64>}, {pipeline_mode = #tpu.pipeline_mode<synchronous>, transform_indices = @transform_1, window_bounds = array<i64: 2, 1, 1, 64>}, {pipeline_mode = #tpu.pipeline_mode<synchronous>, transform_indices = @transform_2, window_bounds = array<i64: 2, 1, 1, 64>}, {pipeline_mode = #tpu.pipeline_mode<synchronous>, transform_indices = @transform_3, window_bounds = array<i64: 2, 64, 64>}, {transform_indices = @transform_4, window_bounds = array<i64: 16, 8, 64>}]} {
    %c0 = arith.constant 0 : index
    %c0_0 = arith.constant 0 : index
    %c0_1 = arith.constant 0 : index
    %c0_2 = arith.constant 0 : index
    %0 = vector.load %arg1[%c0, %c0_0, %c0_1, %c0_2] : memref<16x2x8x64xf32, #tpu.memory_space<vmem>>, vector<16x1x8x64xf32>
    %1 = vector.shape_cast %0 : vector<16x1x8x64xf32> to vector<16x8x64xf32>
    %c0_3 = arith.constant 0 : index
    %c1 = arith.constant 1 : index
    %c0_4 = arith.constant 0 : index
    %c0_5 = arith.constant 0 : index
    %2 = vector.load %arg1[%c0_3, %c1, %c0_4, %c0_5] : memref<16x2x8x64xf32, #tpu.memory_space<vmem>>, vector<16x1x8x64xf32>
    %3 = vector.shape_cast %2 : vector<16x1x8x64xf32> to vector<16x8x64xf32>
    %cst = arith.constant dense<0.000000e+00> : vector<16x8xf32>
    %4 = vector.multi_reduction <add>, %1, %cst [2] : vector<16x8x64xf32> to vector<16x8xf32>
    %5 = vector.shape_cast %4 : vector<16x8xf32> to vector<16x8x1xf32>
    %cst_6 = arith.constant dense<0.000000e+00> : vector<16x8xf32>
    %6 = vector.multi_reduction <add>, %3, %cst_6 [2] : vector<16x8x64xf32> to vector<16x8xf32>
    %7 = vector.shape_cast %6 : vector<16x8xf32> to vector<16x8x1xf32>
    %8 = arith.addf %5, %7 : vector<16x8x1xf32>
    %cst_7 = arith.constant 7.812500e-03 : f32
    %9 = vector.broadcast %cst_7 : f32 to vector<16x8x1xf32>
    %10 = arith.mulf %8, %9 : vector<16x8x1xf32>
    %11 = vector.broadcast %10 : vector<16x8x1xf32> to vector<16x8x64xf32>
    %12 = arith.subf %1, %11 : vector<16x8x64xf32>
    %13 = vector.broadcast %10 : vector<16x8x1xf32> to vector<16x8x64xf32>
    %14 = arith.subf %3, %13 : vector<16x8x64xf32>
    %15 = arith.mulf %12, %12 : vector<16x8x64xf32>
    %cst_8 = arith.constant dense<0.000000e+00> : vector<16x8xf32>
    %16 = vector.multi_reduction <add>, %15, %cst_8 [2] : vector<16x8x64xf32> to vector<16x8xf32>
    %17 = vector.shape_cast %16 : vector<16x8xf32> to vector<16x8x1xf32>
    %18 = arith.mulf %14, %14 : vector<16x8x64xf32>
    %cst_9 = arith.constant dense<0.000000e+00> : vector<16x8xf32>
    %19 = vector.multi_reduction <add>, %18, %cst_9 [2] : vector<16x8x64xf32> to vector<16x8xf32>
    %20 = vector.shape_cast %19 : vector<16x8xf32> to vector<16x8x1xf32>
    %21 = arith.addf %17, %20 : vector<16x8x1xf32>
    %cst_10 = arith.constant 7.812500e-03 : f32
    %22 = vector.broadcast %cst_10 : f32 to vector<16x8x1xf32>
    %23 = arith.mulf %21, %22 : vector<16x8x1xf32>
    %cst_11 = arith.constant 9.99999974E-6 : f32
    %24 = vector.broadcast %cst_11 : f32 to vector<16x8x1xf32>
    %25 = arith.addf %23, %24 : vector<16x8x1xf32>
    %26 = math.rsqrt %25 : vector<16x8x1xf32>
    %27 = vector.broadcast %26 : vector<16x8x1xf32> to vector<16x8x64xf32>
    %28 = arith.mulf %12, %27 : vector<16x8x64xf32>
    %c0_12 = arith.constant 0 : index
    %c0_13 = arith.constant 0 : index
    %c0_14 = arith.constant 0 : index
    %c0_15 = arith.constant 0 : index
    %29 = vector.load %arg2[%c0_12, %c0_13, %c0_14, %c0_15] : memref<2x1x1x64xf32, #tpu.memory_space<vmem>>, vector<1x1x1x64xf32>
    %30 = vector.shape_cast %29 : vector<1x1x1x64xf32> to vector<1x1x64xf32>
    %31 = vector.broadcast %30 : vector<1x1x64xf32> to vector<16x8x64xf32>
    %32 = arith.mulf %28, %31 : vector<16x8x64xf32>
    %c0_16 = arith.constant 0 : index
    %c0_17 = arith.constant 0 : index
    %c0_18 = arith.constant 0 : index
    %c0_19 = arith.constant 0 : index
    %33 = vector.load %arg3[%c0_16, %c0_17, %c0_18, %c0_19] : memref<2x1x1x64xf32, #tpu.memory_space<vmem>>, vector<1x1x1x64xf32>
    %34 = vector.shape_cast %33 : vector<1x1x1x64xf32> to vector<1x1x64xf32>
    %35 = vector.broadcast %34 : vector<1x1x64xf32> to vector<16x8x64xf32>
    %36 = arith.addf %32, %35 : vector<16x8x64xf32>
    %37 = vector.broadcast %26 : vector<16x8x1xf32> to vector<16x8x64xf32>
    %38 = arith.mulf %14, %37 : vector<16x8x64xf32>
    %c1_20 = arith.constant 1 : index
    %c0_21 = arith.constant 0 : index
    %c0_22 = arith.constant 0 : index
    %c0_23 = arith.constant 0 : index
    %39 = vector.load %arg2[%c1_20, %c0_21, %c0_22, %c0_23] : memref<2x1x1x64xf32, #tpu.memory_space<vmem>>, vector<1x1x1x64xf32>
    %40 = vector.shape_cast %39 : vector<1x1x1x64xf32> to vector<1x1x64xf32>
    %41 = vector.broadcast %40 : vector<1x1x64xf32> to vector<16x8x64xf32>
    %42 = arith.mulf %38, %41 : vector<16x8x64xf32>
    %c1_24 = arith.constant 1 : index
    %c0_25 = arith.constant 0 : index
    %c0_26 = arith.constant 0 : index
    %c0_27 = arith.constant 0 : index
    %43 = vector.load %arg3[%c1_24, %c0_25, %c0_26, %c0_27] : memref<2x1x1x64xf32, #tpu.memory_space<vmem>>, vector<1x1x1x64xf32>
    %44 = vector.shape_cast %43 : vector<1x1x1x64xf32> to vector<1x1x64xf32>
    %45 = vector.broadcast %44 : vector<1x1x64xf32> to vector<16x8x64xf32>
    %46 = arith.addf %42, %45 : vector<16x8x64xf32>
    %47 = vector.shape_cast %36 : vector<16x8x64xf32> to vector<128x64xf32>
    %c0_28 = arith.constant 0 : index
    %c0_29 = arith.constant 0 : index
    %c0_30 = arith.constant 0 : index
    %48 = vector.load %arg4[%c0_28, %c0_29, %c0_30] : memref<2x64x64xf32, #tpu.memory_space<vmem>>, vector<1x64x64xf32>
    %49 = vector.shape_cast %48 : vector<1x64x64xf32> to vector<64x64xf32>
    %cst_31 = arith.constant dense<0.000000e+00> : vector<128x64xf32>
    %50 = tpu.matmul %47, %49, %cst_31 {dimension_numbers = #tpu.dot_dimension_numbers<[1], [0], [0], [1], [0, 0, 1, 1], [], []>} : vector<128x64xf32>, vector<64x64xf32>, vector<128x64xf32> -> vector<128x64xf32>
    %51 = vector.shape_cast %46 : vector<16x8x64xf32> to vector<128x64xf32>
    %c1_32 = arith.constant 1 : index
    %c0_33 = arith.constant 0 : index
    %c0_34 = arith.constant 0 : index
    %52 = vector.load %arg4[%c1_32, %c0_33, %c0_34] : memref<2x64x64xf32, #tpu.memory_space<vmem>>, vector<1x64x64xf32>
    %53 = vector.shape_cast %52 : vector<1x64x64xf32> to vector<64x64xf32>
    %cst_35 = arith.constant dense<0.000000e+00> : vector<128x64xf32>
    %54 = tpu.matmul %51, %53, %cst_35 {dimension_numbers = #tpu.dot_dimension_numbers<[1], [0], [0], [1], [0, 0, 1, 1], [], []>} : vector<128x64xf32>, vector<64x64xf32>, vector<128x64xf32> -> vector<128x64xf32>
    %55 = arith.addf %50, %54 : vector<128x64xf32>
    %56 = vector.shape_cast %55 : vector<128x64xf32> to vector<16x8x64xf32>
    %c0_36 = arith.constant 0 : index
    %c0_37 = arith.constant 0 : index
    %c0_38 = arith.constant 0 : index
    %57 = vector.load %arg5[%c0_36, %c0_37, %c0_38] : memref<16x8x64xf32, #tpu.memory_space<vmem>>, vector<16x8x64xf32>
    tpu.vector_store %arg5[%c0_36, %c0_37, %c0_38], %56 {strides = array<i32>} : memref<16x8x64xf32, #tpu.memory_space<vmem>>, vector<16x8x64xf32>,
    return
  }
  func.func @transform_0(%arg0: i32) -> (i32, i32, i32, i32) {
    %c0_i32 = arith.constant 0 : i32
    %c0_i32_0 = arith.constant 0 : i32
    %c0_i32_1 = arith.constant 0 : i32
    %c0_i32_2 = arith.constant 0 : i32
    return %arg0, %c0_i32, %c0_i32_0, %c0_i32_1 : i32, i32, i32, i32
  }
  func.func @transform_1(%arg0: i32) -> (i32, i32, i32, i32) {
    %c0_i32 = arith.constant 0 : i32
    %c0_i32_0 = arith.constant 0 : i32
    %c0_i32_1 = arith.constant 0 : i32
    %c0_i32_2 = arith.constant 0 : i32
    %c0_i32_3 = arith.constant 0 : i32
    return %c0_i32, %c0_i32_0, %c0_i32_1, %c0_i32_2 : i32, i32, i32, i32
  }
  func.func @transform_2(%arg0: i32) -> (i32, i32, i32, i32) {
    %c0_i32 = arith.constant 0 : i32
    %c0_i32_0 = arith.constant 0 : i32
    %c0_i32_1 = arith.constant 0 : i32
    %c0_i32_2 = arith.constant 0 : i32
    %c0_i32_3 = arith.constant 0 : i32
    return %c0_i32, %c0_i32_0, %c0_i32_1, %c0_i32_2 : i32, i32, i32, i32
  }
  func.func @transform_3(%arg0: i32) -> (i32, i32, i32) {
    %c0_i32 = arith.constant 0 : i32
    %c0_i32_0 = arith.constant 0 : i32
    %c0_i32_1 = arith.constant 0 : i32
    %c0_i32_2 = arith.constant 0 : i32
    return %c0_i32, %c0_i32_0, %c0_i32_1 : i32, i32, i32
  }
  func.func @transform_4(%arg0: i32) -> (i32, i32, i32) {
    %c0_i32 = arith.constant 0 : i32
    %c0_i32_0 = arith.constant 0 : i32
    %c0_i32_1 = arith.constant 0 : i32
    return %arg0, %c0_i32, %c0_i32_0 : i32, i32, i32
  }
}

</mosaic_0001>

<bundles_post_ra>
// kernel: patch_merging_forward.1
= control target key start
LH: loop header
LB: loop body
LE: loop exit
PB: predicated region body
PF: predicated region fallthrough
CT: control target
= control target key end

     0   :  { %vm51_vm0 = vcmask 523264   ;;  %s1930_s0 = inlined_call_operand.vmem [shape: f32[16,2,8,64], index: 0, kind: input, shape index: {}]   ;;  %s1931_s1 = inlined_call_operand.vmem [shape: f32[2,1,1,64], index: 1, kind: input, shape index: {}]   ;;  %s1932_s2 = inlined_call_operand.vmem [shape: f32[2,1,1,64], index: 2, kind: input, shape index: {}]   ;;  %s1933_s3 = inlined_call_operand.vmem [shape: f32[2,64,64], index: 3, kind: input, shape index: {}]   ;;  %s1934_s4 = inlined_call_operand.hbm [shape: f32[16,8,64], index: 4, kind: output, shape index: {}]  }
   0x1   :  { %v1293_v0 = vld [vmem:[%s1930_s0 + $0x10] sm:$0xff]  ;;  %v1298_v1 = vld [vmem:[%s1930_s0] sm:$0xff]  ;;  %v1303_v2 = vld [vmem:[%s1930_s0 + $0x18] sm:$0xff] }
   0x2   :  { %v55_v3 = vsel %vm51_vm0, %v1293_v0, 0.0  ;;  %v52_v4 = vsel %vm51_vm0, %v1298_v1, 0.0  ;;  %v1312_v5 = vld [vmem:[%s1930_s0 + $0x8] sm:$0xff]  ;;  %v103_v6 = vsel %vm51_vm0, %v1303_v2, 0.0  ;;  %v1326_v9 = vld [vmem:[%s1930_s0 + $0x20] sm:$0xff]  ;;  %v1335_v12 = vld [vmem:[%s1930_s0 + $0x38] sm:$0xff] }
   0x3   :  { %56 = vadd.xlane.f32.xlu1 %v55_v3  ;;  %53 = vadd.xlane.f32.xlu0 %v52_v4  ;;  %v100_v7 = vsel %vm51_vm0, %v1312_v5, 0.0  ;;  %v1321_v8 = vld [vmem:[%s1930_s0 + $0x28] sm:$0xff]  ;;  %v58_v11 = vsel %vm51_vm0, %v1326_v9, 0.0  ;;  %v1340_v13 = vld [vmem:[%s1930_s0 + $0x30] sm:$0xff]  ;;  %v109_v14 = vsel %vm51_vm0, %v1335_v12, 0.0 }
   0x4   :  { %v106_v10 = vsel %vm51_vm0, %v1321_v8, 0.0  ;;  %v61_v15 = vsel %vm51_vm0, %v1340_v13, 0.0 }
   0x7   :  { %104 = vadd.xlane.f32.xlu1 %v103_v6  ;;  %101 = vadd.xlane.f32.xlu0 %v100_v7 }
   0xb   :  { %107 = vadd.xlane.f32.xlu1 %v106_v10  ;;  %59 = vadd.xlane.f32.xlu0 %v58_v11 }
   0xc   :  { %9 = vsyncpa [#allocation3], 0  ;;  %v1349_v16 = vld [vmem:[%s1930_s0 + $0x48] sm:$0xff]  ;;  %v1354_v17 = vld [vmem:[%s1930_s0 + $0x40] sm:$0xff] }
   0xd   :  { %v112_v18 = vsel %vm51_vm0, %v1349_v16, 0.0  ;;  %v64_v19 = vsel %vm51_vm0, %v1354_v17, 0.0  ;;  %v1363_v20 = vld [vmem:[%s1930_s0 + $0x58] sm:$0xff]  ;;  %v1368_v21 = vld [vmem:[%s1930_s0 + $0x50] sm:$0xff]  ;;  %v1377_v24 = vld [vmem:[%s1930_s0 + $0x68] sm:$0xff] }
   0xe   :  { %v115_v22 = vsel %vm51_vm0, %v1363_v20, 0.0  ;;  %v67_v23 = vsel %vm51_vm0, %v1368_v21, 0.0  ;;  %v1382_v25 = vld [vmem:[%s1930_s0 + $0x60] sm:$0xff]  ;;  %v118_v26 = vsel %vm51_vm0, %v1377_v24, 0.0  ;;  %v1391_v28 = vld [vmem:[%s1930_s0 + $0x78] sm:$0xff]  ;;  %v1396_v29 = vld [vmem:[%s1930_s0 + $0x70] sm:$0xff] }
   0xf   :  { %110 = vadd.xlane.f32.xlu1 %v109_v14  ;;  %62 = vadd.xlane.f32.xlu0 %v61_v15  ;;  %v70_v27 = vsel %vm51_vm0, %v1382_v25, 0.0  ;;  %v121_v30 = vsel %vm51_vm0, %v1391_v28, 0.0  ;;  %v73_v31 = vsel %vm51_vm0, %v1396_v29, 0.0  ;;  %v1405_v32 = vld [vmem:[%s1930_s0 + $0x88] sm:$0xff]  ;;  %v1410_v33 = vld [vmem:[%s1930_s0 + $0x80] sm:$0xff]  ;;  %v1419_v36 = vld [vmem:[%s1930_s0 + $0x98] sm:$0xff] }
  0x10   :  { %v124_v34 = vsel %vm51_vm0, %v1405_v32, 0.0  ;;  %v76_v35 = vsel %vm51_vm0, %v1410_v33, 0.0  ;;  %v1424_v37 = vld [vmem:[%s1930_s0 + $0x90] sm:$0xff]  ;;  %v127_v38 = vsel %vm51_vm0, %v1419_v36, 0.0  ;;  %v1433_v40 = vld [vmem:[%s1930_s0 + $0xa8] sm:$0xff]  ;;  %v1438_v41 = vld [vmem:[%s1930_s0 + $0xa0] sm:$0xff] }
  0x11   :  { %v79_v39 = vsel %vm51_vm0, %v1424_v37, 0.0  ;;  %v130_v42 = vsel %vm51_vm0, %v1433_v40, 0.0  ;;  %v82_v43 = vsel %vm51_vm0, %v1438_v41, 0.0  ;;  %v1447_v44 = vld [vmem:[%s1930_s0 + $0xb8] sm:$0xff]  ;;  %v1452_v45 = vld [vmem:[%s1930_s0 + $0xb0] sm:$0xff]  ;;  %v1461_v48 = vld [vmem:[%s1930_s0 + $0xc8] sm:$0xff] }
  0x12   :  { %v133_v46 = vsel %vm51_vm0, %v1447_v44, 0.0  ;;  %v85_v47 = vsel %vm51_vm0, %v1452_v45, 0.0  ;;  %v1466_v49 = vld [vmem:[%s1930_s0 + $0xc0] sm:$0xff]  ;;  %v136_v50 = vsel %vm51_vm0, %v1461_v48, 0.0  ;;  %v1475_v52 = vld [vmem:[%s1930_s0 + $0xd8] sm:$0xff]  ;;  %v1480_v53 = vld [vmem:[%s1930_s0 + $0xd0] sm:$0xff] }
  0x13   :  { %113 = vadd.xlane.f32.xlu1 %v112_v18  ;;  %65 = vadd.xlane.f32.xlu0 %v64_v19  ;;  %v88_v51 = vsel %vm51_vm0, %v1466_v49, 0.0  ;;  %v139_v54 = vsel %vm51_vm0, %v1475_v52, 0.0  ;;  %v91_v55 = vsel %vm51_vm0, %v1480_v53, 0.0  ;;  %v1489_v56 = vld [vmem:[%s1930_s0 + $0xe8] sm:$0xff]  ;;  %v1494_v57 = vld [vmem:[%s1930_s0 + $0xe0] sm:$0xff]  ;;  %v1503_v60 = vld [vmem:[%s1930_s0 + $0xf8] sm:$0xff] }
  0x14   :  { %v142_v58 = vsel %vm51_vm0, %v1489_v56, 0.0  ;;  %v94_v59 = vsel %vm51_vm0, %v1494_v57, 0.0  ;;  %v1508_v61 = vld [vmem:[%s1930_s0 + $0xf0] sm:$0xff]  ;;  %v145_v62 = vsel %vm51_vm0, %v1503_v60, 0.0 }
  0x15   :  { %v97_v63 = vsel %vm51_vm0, %v1508_v61, 0.0 }
  0x17   :  { %116 = vadd.xlane.f32.xlu1 %v115_v22  ;;  %68 = vadd.xlane.f32.xlu0 %v67_v23 }
  0x1b   :  { %119 = vadd.xlane.f32.xlu1 %v118_v26  ;;  %71 = vadd.xlane.f32.xlu0 %v70_v27 }
  0x1f   :  { %122 = vadd.xlane.f32.xlu1 %v121_v30  ;;  %74 = vadd.xlane.f32.xlu0 %v73_v31 }
  0x23   :  { %125 = vadd.xlane.f32.xlu1 %v124_v34  ;;  %77 = vadd.xlane.f32.xlu0 %v76_v35 }
  0x27   :  { %128 = vadd.xlane.f32.xlu1 %v127_v38  ;;  %80 = vadd.xlane.f32.xlu0 %v79_v39 }
  0x2b   :  { %131 = vadd.xlane.f32.xlu1 %v130_v42  ;;  %83 = vadd.xlane.f32.xlu0 %v82_v43 }
  0x2f   :  { %134 = vadd.xlane.f32.xlu1 %v133_v46  ;;  %86 = vadd.xlane.f32.xlu0 %v85_v47 }
  0x33   :  { %137 = vadd.xlane.f32.xlu1 %v136_v50  ;;  %89 = vadd.xlane.f32.xlu0 %v88_v51 }
  0x37   :  { %140 = vadd.xlane.f32.xlu1 %v139_v54  ;;  %92 = vadd.xlane.f32.xlu0 %v91_v55 }
  0x3b   :  { %143 = vadd.xlane.f32.xlu1 %v142_v58  ;;  %95 = vadd.xlane.f32.xlu0 %v94_v59 }
  0x3f   :  { %146 = vadd.xlane.f32.xlu1 %v145_v62  ;;  %98 = vadd.xlane.f32.xlu0 %v97_v63 }
  0x90   :  { %v57_v3 = vpop.xlane.xlu1 %56  ;;  %v54_v4 = vpop.xlane.xlu0 %53 }
  0x94   :  { %v105_v6 = vpop.xlane.xlu1 %104  ;;  %v102_v7 = vpop.xlane.xlu0 %101 }
  0x95   :  { %v149_v10 = vadd.f32 %v105_v6, %v57_v3  ;;  %v148_v11 = vadd.f32 %v102_v7, %v54_v4 }
  0x97   :  { %v165_v14 = vmul.f32 0.0078125, %v149_v10  ;;  %v164_v15 = vmul.f32 0.0078125, %v148_v11 }
  0x98   :  { %v108_v18 = vpop.xlane.xlu1 %107  ;;  %v60_v19 = vpop.xlane.xlu0 %59 }
  0x99   :  { %v1515_v22 = vsub.f32 %v1293_v0, %v165_v14  ;;  %v1518_v23 = vsub.f32 %v1303_v2, %v165_v14  ;;  %v1521_v26 = vsub.f32 %v1298_v1, %v164_v15  ;;  %v1524_v27 = vsub.f32 %v1312_v5, %v164_v15 }
  0x9a   :  { %v150_v30 = vadd.f32 %v108_v18, %v60_v19 }
  0x9b   :  { %v276_v31 = vmul.f32 %v1524_v27, %v1524_v27  ;;  %v212_v34 = vmul.f32 %v1521_v26, %v1521_v26  ;;  %v277_v2 = vmul.f32 %v1518_v23, %v1518_v23  ;;  %v213_v5 = vmul.f32 %v1515_v22, %v1515_v22 }
  0x9c   :  { %v166_v35 = vmul.f32 0.0078125, %v150_v30  ;;  %v111_v38 = vpop.xlane.xlu1 %110  ;;  %v63_v0 = vpop.xlane.xlu0 %62 }
  0x9d   :  { %v292_v39 = vsel %vm51_vm0, %v276_v31, 0.0  ;;  %v228_v1 = vsel %vm51_vm0, %v212_v34, 0.0  ;;  %v151_v42 = vadd.f32 %v111_v38, %v63_v0  ;;  %v295_v50 = vsel %vm51_vm0, %v277_v2, 0.0 }
  0x9e   :  { %v1537_v43 = vsub.f32 %v1326_v9, %v166_v35  ;;  %v1540_v46 = vsub.f32 %v1321_v8, %v166_v35  ;;  %293 = vadd.xlane.f32.xlu1 %v292_v39  ;;  %229 = vadd.xlane.f32.xlu0 %v228_v1  ;;  %v231_v8 = vsel %vm51_vm0, %v213_v5, 0.0 }
  0x9f   :  { %v167_v47 = vmul.f32 0.0078125, %v151_v42 }
  0xa0   :  { %v114_v51 = vpop.xlane.xlu1 %113  ;;  %v66_v54 = vpop.xlane.xlu0 %65  ;;  %v278_v55 = vmul.f32 %v1540_v46, %v1540_v46  ;;  %v214_v58 = vmul.f32 %v1537_v43, %v1537_v43 }
  0xa1   :  { %v1548_v59 = vsub.f32 %v1340_v13, %v167_v47  ;;  %v1551_v9 = vsub.f32 %v1335_v12, %v167_v47  ;;  %v152_v62 = vadd.f32 %v114_v51, %v66_v54 }
  0xa2   :  { %296 = vadd.xlane.f32.xlu1 %v295_v50  ;;  %232 = vadd.xlane.f32.xlu0 %v231_v8  ;;  %v298_v63 = vsel %vm51_vm0, %v278_v55, 0.0  ;;  %v234_v4 = vsel %vm51_vm0, %v214_v58, 0.0 }
  0xa3   :  { %v168_v3 = vmul.f32 0.0078125, %v152_v62  ;;  %v279_v6 = vmul.f32 %v1551_v9, %v1551_v9  ;;  %v215_v13 = vmul.f32 %v1548_v59, %v1548_v59 }
  0xa4   :  { %v117_v7 = vpop.xlane.xlu1 %116  ;;  %v69_v10 = vpop.xlane.xlu0 %68 }
  0xa5   :  { %v1561_v12 = vsub.f32 %v1354_v17, %v168_v3  ;;  %v1564_v11 = vsub.f32 %v1349_v16, %v168_v3  ;;  %v153_v14 = vadd.f32 %v117_v7, %v69_v10  ;;  %v301_v15 = vsel %vm51_vm0, %v279_v6, 0.0 }
  0xa6   :  { %299 = vadd.xlane.f32.xlu1 %v298_v63  ;;  %235 = vadd.xlane.f32.xlu0 %v234_v4  ;;  %v237_v19 = vsel %vm51_vm0, %v215_v13, 0.0 }
  0xa7   :  { %v169_v18 = vmul.f32 0.0078125, %v153_v14  ;;  %v280_v30 = vmul.f32 %v1564_v11, %v1564_v11  ;;  %v216_v31 = vmul.f32 %v1561_v12, %v1561_v12 }
  0xa8   :  { %v120_v34 = vpop.xlane.xlu1 %119  ;;  %v72_v17 = vpop.xlane.xlu0 %71 }
  0xa9   :  { %v1573_v35 = vsub.f32 %v1368_v21, %v169_v18  ;;  %v1576_v16 = vsub.f32 %v1363_v20, %v169_v18  ;;  %v154_v38 = vadd.f32 %v120_v34, %v72_v17  ;;  %v304_v0 = vsel %vm51_vm0, %v280_v30, 0.0  ;;  %v988_v30 = vld [vmem:[%s1933_s3 + $0x48] sm:$0xff] }
  0xaa   :  { %302 = vadd.xlane.f32.xlu1 %v301_v15  ;;  %238 = vadd.xlane.f32.xlu0 %v237_v19  ;;  %v240_v39 = vsel %vm51_vm0, %v216_v31, 0.0  ;;  %v987_v19 = vld [vmem:[%s1933_s3 + $0x40] sm:$0xff]  ;;  %v531_v17 = vld [vmem:[%s1933_s3 + $0x8] sm:$0xff] }
  0xab   :  { %v170_v2 = vmul.f32 0.0078125, %v154_v38  ;;  %v281_v1 = vmul.f32 %v1576_v16, %v1576_v16  ;;  %v217_v42 = vmul.f32 %v1573_v35, %v1573_v35  ;;  %v530_v31 = vld [vmem:[%s1933_s3] sm:$0xff]  ;;  %v1155_v34 = vpack.c.bf16 %v988_v30, %v987_v19 }
  0xac   :  { %v123_v5 = vpop.xlane.xlu1 %122  ;;  %v75_v21 = vpop.xlane.xlu0 %74  ;;  %v534_v19 = vld [vmem:[%s1933_s3 + $0x20] sm:$0xff] }
  0xad   :  { %v1585_v47 = vsub.f32 %v1382_v25, %v170_v2  ;;  %v1588_v20 = vsub.f32 %v1377_v24, %v170_v2  ;;  %v155_v50 = vadd.f32 %v123_v5, %v75_v21  ;;  %v307_v51 = vsel %vm51_vm0, %v281_v1, 0.0  ;;  %1156 = vmatprep.subr.bf16.mxu1 %v1155_v34 }
  0xae   :  { %305 = vadd.xlane.f32.xlu1 %v304_v0  ;;  %241 = vadd.xlane.f32.xlu0 %v240_v39  ;;  %v243_v55 = vsel %vm51_vm0, %v217_v42, 0.0  ;;  %v1171_v39 = vpack.c.bf16 %v531_v17, %v530_v31  ;;  %v535_v31 = vld [vmem:[%s1933_s3 + $0x28] sm:$0xff] }
  0xaf   :  { %v171_v54 = vmul.f32 0.0078125, %v155_v50  ;;  %v282_v58 = vmul.f32 %v1588_v20, %v1588_v20  ;;  %v218_v8 = vmul.f32 %v1585_v47, %v1585_v47  ;;  %1158 = vmatpush3.bf16.msra.mxu1 %v1155_v34  ;;  %v1179_v17 = vpack.c.bf16 %v535_v31, %v534_v19 }
  0xb0   :  { %v126_v62 = vpop.xlane.xlu1 %125  ;;  %v78_v25 = vpop.xlane.xlu0 %77  ;;  %1172 = vmatprep.subr.bf16.mxu0 %v1171_v39 }
  0xb1   :  { %v1597_v63 = vsub.f32 %v1396_v29, %v171_v54  ;;  %v1600_v24 = vsub.f32 %v1391_v28, %v171_v54  ;;  %v156_v3 = vadd.f32 %v126_v62, %v78_v25  ;;  %v310_v4 = vsel %vm51_vm0, %v282_v58, 0.0  ;;  %v990_v54 = vld [vmem:[%s1933_s3 + $0x58] sm:$0xff]  ;;  %1174 = vmatpush3.bf16.msra.mxu0 %v1171_v39 }
  0xb2   :  { %308 = vadd.xlane.f32.xlu1 %v307_v51  ;;  %244 = vadd.xlane.f32.xlu0 %v243_v55  ;;  %v246_v13 = vsel %vm51_vm0, %v218_v8, 0.0  ;;  %v989_v51 = vld [vmem:[%s1933_s3 + $0x50] sm:$0xff]  ;;  %v533_v8 = vld [vmem:[%s1933_s3 + $0x18] sm:$0xff] }
  0xb3   :  { %v172_v6 = vmul.f32 0.0078125, %v156_v3  ;;  %v283_v7 = vmul.f32 %v1600_v24, %v1600_v24  ;;  %v219_v10 = vmul.f32 %v1597_v63, %v1597_v63  ;;  %v532_v55 = vld [vmem:[%s1933_s3 + $0x10] sm:$0xff]  ;;  %v1159_v58 = vpack.c.bf16 %v990_v54, %v989_v51 }
  0xb4   :  { %v129_v14 = vpop.xlane.xlu1 %128  ;;  %v81_v29 = vpop.xlane.xlu0 %80  ;;  %v536_v51 = vld [vmem:[%s1933_s3 + $0x30] sm:$0xff] }
  0xb5   :  { %v1609_v15 = vsub.f32 %v1410_v33, %v172_v6  ;;  %v1612_v28 = vsub.f32 %v1405_v32, %v172_v6  ;;  %v157_v18 = vadd.f32 %v129_v14, %v81_v29  ;;  %v313_v33 = vsel %vm51_vm0, %v283_v7, 0.0  ;;  %1160 = vmatprep.subr.bf16.mxu1 %v1159_v58  ;;  %v991_v29 = vld [vmem:[%s1933_s3 + $0x60] sm:$0xff] }
  0xb6   :  { %311 = vadd.xlane.f32.xlu1 %v310_v4  ;;  %247 = vadd.xlane.f32.xlu0 %v246_v13  ;;  %v249_v32 = vsel %vm51_vm0, %v219_v10, 0.0  ;;  %v1175_v4 = vpack.c.bf16 %v533_v8, %v532_v55  ;;  %v537_v55 = vld [vmem:[%s1933_s3 + $0x38] sm:$0xff] }
  0xb7   :  { %v173_v38 = vmul.f32 0.0078125, %v157_v18  ;;  %v284_v0 = vmul.f32 %v1612_v28, %v1612_v28  ;;  %v220_v2 = vmul.f32 %v1609_v15, %v1609_v15  ;;  %1162 = vmatpush3.bf16.msra.mxu1 %v1159_v58  ;;  %v992_v18 = vld [vmem:[%s1933_s3 + $0x68] sm:$0xff]  ;;  %v1183_v8 = vpack.c.bf16 %v537_v55, %v536_v51 }
  0xb8   :  { %v132_v1 = vpop.xlane.xlu1 %131  ;;  %v84_v42 = vpop.xlane.xlu0 %83  ;;  %1176 = vmatprep.subr.bf16.mxu0 %v1175_v4  ;;  %v1163_v30 = vpack.c.bf16 %v992_v18, %v991_v29 }
  0xb9   :  { %v1633_v5 = vsub.f32 %v1424_v37, %v173_v38  ;;  %v1636_v21 = vsub.f32 %v1419_v36, %v173_v38  ;;  %v158_v50 = vadd.f32 %v132_v1, %v84_v42  ;;  %v316_v36 = vsel %vm51_vm0, %v284_v0, 0.0  ;;  %1178 = vmatpush3.bf16.msra.mxu0 %v1175_v4  ;;  %v993_v42 = vld [vmem:[%s1933_s3 + $0x70] sm:$0xff] }
  0xba   :  { %314 = vadd.xlane.f32.xlu1 %v313_v33  ;;  %250 = vadd.xlane.f32.xlu0 %v249_v32  ;;  %v252_v37 = vsel %vm51_vm0, %v220_v2, 0.0 }
  0xbb   :  { %v174_v62 = vmul.f32 0.0078125, %v158_v50  ;;  %v285_v25 = vmul.f32 %v1636_v21, %v1636_v21  ;;  %v221_v3 = vmul.f32 %v1633_v5, %v1633_v5  ;;  %1164 = vmatprep.subr.bf16.mxu1 %v1163_v30  ;;  %1180 = vmatprep.subr.bf16.mxu0 %v1179_v17  ;;  %v994_v50 = vld [vmem:[%s1933_s3 + $0x78] sm:$0xff] }
  0xbc   :  { %v135_v6 = vpop.xlane.xlu1 %134  ;;  %v87_v13 = vpop.xlane.xlu0 %86  ;;  %1166 = vmatpush3.bf16.msra.mxu1 %v1163_v30  ;;  %v1167_v54 = vpack.c.bf16 %v994_v50, %v993_v42 }
  0xbd   :  { %v1657_v7 = vsub.f32 %v1438_v41, %v174_v62  ;;  %v1660_v10 = vsub.f32 %v1433_v40, %v174_v62  ;;  %v159_v14 = vadd.f32 %v135_v6, %v87_v13  ;;  %v319_v40 = vsel %vm51_vm0, %v285_v25, 0.0  ;;  %1182 = vmatpush3.bf16.msra.mxu0 %v1179_v17 }
  0xbe   :  { %317 = vadd.xlane.f32.xlu1 %v316_v36  ;;  %253 = vadd.xlane.f32.xlu0 %v252_v37  ;;  %v255_v41 = vsel %vm51_vm0, %v221_v3, 0.0 }
  0xbf   :  { %v175_v33 = vmul.f32 0.0078125, %v159_v14  ;;  %v286_v32 = vmul.f32 %v1660_v10, %v1660_v10  ;;  %v222_v34 = vmul.f32 %v1657_v7, %v1657_v7  ;;  %1168 = vmatprep.subr.bf16.mxu1 %v1167_v54  ;;  %1184 = vmatprep.subr.bf16.mxu0 %v1183_v8 }
  0xc0   :  { %v138_v38 = vpop.xlane.xlu1 %137  ;;  %v90_v0 = vpop.xlane.xlu0 %89  ;;  %1170 = vmatpush3.bf16.msra.mxu1 %v1167_v54 }
  0xc1   :  { %v1681_v2 = vsub.f32 %v1452_v45, %v175_v33  ;;  %v1684_v39 = vsub.f32 %v1447_v44, %v175_v33  ;;  %v160_v1 = vadd.f32 %v138_v38, %v90_v0  ;;  %v322_v44 = vsel %vm51_vm0, %v286_v32, 0.0  ;;  %1186 = vmatpush3.bf16.msra.mxu0 %v1183_v8 }
  0xc2   :  { %320 = vadd.xlane.f32.xlu1 %v319_v40  ;;  %256 = vadd.xlane.f32.xlu0 %v255_v41  ;;  %v258_v45 = vsel %vm51_vm0, %v222_v34, 0.0 }
  0xc3   :  { %v176_v36 = vmul.f32 0.0078125, %v160_v1  ;;  %v287_v37 = vmul.f32 %v1684_v39, %v1684_v39  ;;  %v223_v58 = vmul.f32 %v1681_v2, %v1681_v2 }
  0xc4   :  { %v141_v62 = vpop.xlane.xlu1 %140  ;;  %v93_v25 = vpop.xlane.xlu0 %92 }
  0xc5   :  { %v1705_v3 = vsub.f32 %v1466_v49, %v176_v36  ;;  %v1708_v4 = vsub.f32 %v1461_v48, %v176_v36  ;;  %v161_v6 = vadd.f32 %v141_v62, %v93_v25  ;;  %v325_v13 = vsel %vm51_vm0, %v287_v37, 0.0 }
  0xc6   :  { %323 = vadd.xlane.f32.xlu1 %v322_v44  ;;  %259 = vadd.xlane.f32.xlu0 %v258_v45  ;;  %v261_v29 = vsel %vm51_vm0, %v223_v58, 0.0 }
  0xc7   :  { %v177_v14 = vmul.f32 0.0078125, %v161_v6  ;;  %v288_v18 = vmul.f32 %v1708_v4, %v1708_v4  ;;  %v224_v49 = vmul.f32 %v1705_v3, %v1705_v3 }
  0xc8   :  { %v144_v19 = vpop.xlane.xlu1 %143  ;;  %v96_v48 = vpop.xlane.xlu0 %95 }
  0xc9   :  { %v1717_v40 = vsub.f32 %v1480_v53, %v177_v14  ;;  %v1720_v41 = vsub.f32 %v1475_v52, %v177_v14  ;;  %v162_v30 = vadd.f32 %v144_v19, %v96_v48  ;;  %v328_v31 = vsel %vm51_vm0, %v288_v18, 0.0 }
  0xca   :  { %326 = vadd.xlane.f32.xlu1 %v325_v13  ;;  %262 = vadd.xlane.f32.xlu0 %v261_v29  ;;  %v264_v32 = vsel %vm51_vm0, %v224_v49, 0.0 }
  0xcb   :  { %v178_v33 = vmul.f32 0.0078125, %v162_v30  ;;  %v289_v34 = vmul.f32 %v1720_v41, %v1720_v41  ;;  %v225_v17 = vmul.f32 %v1717_v40, %v1717_v40 }
  0xcc   :  { %v147_v38 = vpop.xlane.xlu1 %146  ;;  %v99_v53 = vpop.xlane.xlu0 %98 }
  0xcd   :  { %v1729_v0 = vsub.f32 %v1494_v57, %v178_v33  ;;  %v1732_v52 = vsub.f32 %v1489_v56, %v178_v33  ;;  %v163_v1 = vadd.f32 %v147_v38, %v99_v53  ;;  %v331_v42 = vsel %vm51_vm0, %v289_v34, 0.0 }
  0xce   :  { %329 = vadd.xlane.f32.xlu1 %v328_v31  ;;  %265 = vadd.xlane.f32.xlu0 %v264_v32  ;;  %v267_v51 = vsel %vm51_vm0, %v225_v17, 0.0 }
  0xcf   :  { %v179_v50 = vmul.f32 0.0078125, %v163_v1  ;;  %v290_v44 = vmul.f32 %v1732_v52, %v1732_v52  ;;  %v226_v45 = vmul.f32 %v1729_v0, %v1729_v0 }
  0xd1   :  { %v1741_v57 = vsub.f32 %v1508_v61, %v179_v50  ;;  %v1744_v56 = vsub.f32 %v1503_v60, %v179_v50  ;;  %v334_v54 = vsel %vm51_vm0, %v290_v44, 0.0  ;;  %v270_v55 = vsel %vm51_vm0, %v226_v45, 0.0  ;;  %v1757_v44 = vld [vmem:[%s1931_s1 + $0x1] ss:$0 sm:$0xff]  ;;  %v1762_v45 = vld [vmem:[%s1931_s1] ss:$0 sm:$0xff] }
  0xd2   :  { %332 = vadd.xlane.f32.xlu1 %v331_v42  ;;  %268 = vadd.xlane.f32.xlu0 %v267_v51  ;;  %s1262_s1 = smov [#allocation2]  }
  0xd3   :  { %v291_v36 = vmul.f32 %v1744_v56, %v1744_v56  ;;  %v227_v37 = vmul.f32 %v1741_v57, %v1741_v57 }
  0xd5   :  { %v337_v61 = vsel %vm51_vm0, %v291_v36, 0.0  ;;  %v273_v58 = vsel %vm51_vm0, %v227_v37, 0.0  ;;  %v1769_v37 = vld [vmem:[%s1932_s2 + $0x1] ss:$0 sm:$0xff] }
  0xd6   :  { %335 = vadd.xlane.f32.xlu1 %v334_v54  ;;  %271 = vadd.xlane.f32.xlu0 %v270_v55 }
  0xda   :  { %338 = vadd.xlane.f32.xlu1 %v337_v61  ;;  %274 = vadd.xlane.f32.xlu0 %v273_v58  ;;  %v1774_v61 = vld [vmem:[%s1932_s2] ss:$0 sm:$0xff]  ;;  %s954_s2 = sshll.u32 %s1262_s1, 4  ;;  %s955_s2 = int_to_ptr.vmem [resolvable:$true] %s954_s2 }
  0xdb   :  { %s1238_s12 = scalar_lea.vmem %s955_s2, 2048  ;;  %p1243_p1 = scmp.lt.s32.totalorder %s955_s2, %s955_s2 }
  0xdc   :  { %p1239_p0 = scmp.ne.s32.totalorder %s955_s2, %s1238_s12  ;;  %p1244_p2 = scmp.lt.s32.totalorder %s1238_s12, %s1238_s12 }
  0xde   :  { %p1245_p3 = por %p1244_p2, %p1243_p1 }
  0xe0   :  { %p1246_p4 = pnand %p1245_p3, %p1239_p0 }
 0x12b   :  { %v294_v60 = vpop.xlane.xlu1 %293  ;;  %v230_v8 = vpop.xlane.xlu0 %229 }
 0x12c   :  { %v340_v62 = vadd.f32 %v294_v60, %v230_v8 }
 0x12e   :  { %v356_v25 = vmul.f32 0.0078125, %v340_v62 }
 0x12f   :  { %v297_v6 = vpop.xlane.xlu1 %296  ;;  %v233_v13 = vpop.xlane.xlu0 %232 }
 0x130   :  { %v372_v14 = vadd.f32 1e-05, %v356_v25  ;;  %v341_v29 = vadd.f32 %v297_v6, %v233_v13 }
 0x132   :  { %1206 = vrsqrt.f32 %v372_v14  ;;  %v357_v18 = vmul.f32 0.0078125, %v341_v29 }
 0x133   :  { %v300_v49 = vpop.xlane.xlu1 %299  ;;  %v236_v19 = vpop.xlane.xlu0 %235 }
 0x134   :  { %v373_v48 = vadd.f32 1e-05, %v357_v18  ;;  %v342_v30 = vadd.f32 %v300_v49, %v236_v19 }
 0x136   :  { %1208 = vrsqrt.f32 %v373_v48  ;;  %v358_v31 = vmul.f32 0.0078125, %v342_v30 }
 0x137   :  { %v303_v33 = vpop.xlane.xlu1 %302  ;;  %v239_v32 = vpop.xlane.xlu0 %238 }
 0x138   :  { %v374_v34 = vadd.f32 1e-05, %v358_v31  ;;  %v343_v17 = vadd.f32 %v303_v33, %v239_v32 }
 0x13a   :  { %1210 = vrsqrt.f32 %v374_v34  ;;  %v359_v38 = vmul.f32 0.0078125, %v343_v17 }
 0x13b   :  { %v306_v53 = vpop.xlane.xlu1 %305  ;;  %v242_v1 = vpop.xlane.xlu0 %241 }
 0x13c   :  { %v1207_v42 = vpop.eup %1206  ;;  %v375_v50 = vadd.f32 1e-05, %v359_v38  ;;  %v344_v51 = vadd.f32 %v306_v53, %v242_v1 }
 0x13d   :  { %v466_v54 = vmul.f32 %v1207_v42, %v1524_v27  ;;  %v404_v55 = vmul.f32 %v1207_v42, %v1521_v26 }
 0x13e   :  { %1212 = vrsqrt.f32 %v375_v50  ;;  %v360_v36 = vmul.f32 0.0078125, %v344_v51 }
 0x13f   :  { %v309_v58 = vpop.xlane.xlu1 %308  ;;  %v245_v60 = vpop.xlane.xlu0 %244  ;;  %v490_v8 = vmul.f32 %v1757_v44, %v466_v54  ;;  %v427_v27 = vmul.f32 %v1762_v45, %v404_v55 }
 0x140   :  { %v1209_v62 = vpop.eup %1208  ;;  %v376_v26 = vadd.f32 1e-05, %v360_v36  ;;  %v345_v25 = vadd.f32 %v309_v58, %v245_v60 }
 0x141   :  { %v514_v6 = vadd.f32 %v1769_v37, %v490_v8  ;;  %v450_v13 = vadd.f32 %v1774_v61, %v427_v27  ;;  %v467_v14 = vmul.f32 %v1209_v62, %v1518_v23  ;;  %v405_v29 = vmul.f32 %v1209_v62, %v1515_v22 }
 0x142   :  { %1214 = vrsqrt.f32 %v376_v26  ;;  %v361_v18 = vmul.f32 0.0078125, %v345_v25 }
 0x143   :  { %v312_v49 = vpop.xlane.xlu1 %311  ;;  %1091 = vmatprep.mubr.msk.f32.mxu1 %vm51_vm0, %v514_v6  ;;  %1131 = vmatprep.mubr.msk.f32.mxu0 %vm51_vm0, %v450_v13  ;;  %v248_v19 = vpop.xlane.xlu0 %247  ;;  %v491_v48 = vmul.f32 %v1757_v44, %v467_v14  ;;  %v428_v30 = vmul.f32 %v1762_v45, %v405_v29 }
 0x144   :  { %v1211_v31 = vpop.eup %1210  ;;  %v377_v33 = vadd.f32 1e-05, %v361_v18  ;;  %v346_v32 = vadd.f32 %v312_v49, %v248_v19 }
 0x145   :  { %v515_v34 = vadd.f32 %v1769_v37, %v491_v48  ;;  %v451_v23 = vadd.f32 %v1774_v61, %v428_v30  ;;  %v468_v22 = vmul.f32 %v1211_v31, %v1540_v46  ;;  %v406_v17 = vmul.f32 %v1211_v31, %v1537_v43 }
 0x146   :  { %1216 = vrsqrt.f32 %v377_v33  ;;  %v362_v38 = vmul.f32 0.0078125, %v346_v32 }
 0x147   :  { %v315_v53 = vpop.xlane.xlu1 %314  ;;  %1092 = vmatmul.mubr.msk.f32.vlgmr.msra.gmra.mrb[0].mxu1 %vm51_vm0, %v515_v34  ;;  %1132 = vmatmul.mubr.msk.f32.vlgmr.msra.gmra.mrb[0].mxu0 %vm51_vm0, %v451_v23  ;;  %v251_v1 = vpop.xlane.xlu0 %250  ;;  %v492_v42 = vmul.f32 %v1757_v44, %v468_v22  ;;  %v429_v50 = vmul.f32 %v1762_v45, %v406_v17 }
 0x148   :  { %v1213_v51 = vpop.eup %1212  ;;  %v378_v54 = vadd.f32 1e-05, %v362_v38  ;;  %v347_v55 = vadd.f32 %v315_v53, %v251_v1 }
 0x149   :  { %v516_v36 = vadd.f32 %v1769_v37, %v492_v42  ;;  %v452_v46 = vadd.f32 %v1774_v61, %v429_v50  ;;  %v469_v43 = vmul.f32 %v1213_v51, %v1551_v9  ;;  %v407_v58 = vmul.f32 %v1213_v51, %v1548_v59 }
 0x14a   :  { %1218 = vrsqrt.f32 %v378_v54  ;;  %v363_v60 = vmul.f32 0.0078125, %v347_v55 }
 0x14b   :  { %v318_v8 = vpop.xlane.xlu1 %317  ;;  %1094 = vmatprep.mubr.msk.f32.mxu1 %vm51_vm0, %v516_v36  ;;  %1134 = vmatprep.mubr.msk.f32.mxu0 %vm51_vm0, %v452_v46  ;;  %v254_v27 = vpop.xlane.xlu0 %253  ;;  %v493_v62 = vmul.f32 %v1757_v44, %v469_v43  ;;  %v430_v26 = vmul.f32 %v1762_v45, %v407_v58 }
 0x14c   :  { %v1215_v25 = vpop.eup %1214  ;;  %v379_v6 = vadd.f32 1e-05, %v363_v60  ;;  %v348_v13 = vadd.f32 %v318_v8, %v254_v27 }
 0x14d   :  { %v517_v14 = vadd.f32 %v1769_v37, %v493_v62  ;;  %v453_v9 = vadd.f32 %v1774_v61, %v430_v26  ;;  %v470_v59 = vmul.f32 %v1215_v25, %v1564_v11  ;;  %v408_v29 = vmul.f32 %v1215_v25, %v1561_v12 }
 0x14e   :  { %1220 = vrsqrt.f32 %v379_v6  ;;  %v364_v18 = vmul.f32 0.0078125, %v348_v13 }
 0x14f   :  { %v321_v49 = vpop.xlane.xlu1 %320  ;;  %1095 = vmatmul.mubr.msk.f32.gmra.mrb[2].mxu1 %vm51_vm0, %v517_v14  ;;  %1135 = vmatmul.mubr.msk.f32.gmra.mrb[2].mxu0 %vm51_vm0, %v453_v9  ;;  %v257_v19 = vpop.xlane.xlu0 %256  ;;  %v494_v48 = vmul.f32 %v1757_v44, %v470_v59  ;;  %v431_v30 = vmul.f32 %v1762_v45, %v408_v29 }
 0x150   :  { %v1217_v31 = vpop.eup %1216  ;;  %v380_v33 = vadd.f32 1e-05, %v364_v18  ;;  %v349_v32 = vadd.f32 %v321_v49, %v257_v19 }
 0x151   :  { %v518_v34 = vadd.f32 %v1769_v37, %v494_v48  ;;  %v454_v11 = vadd.f32 %v1774_v61, %v431_v30  ;;  %v471_v12 = vmul.f32 %v1217_v31, %v1576_v16  ;;  %v409_v23 = vmul.f32 %v1217_v31, %v1573_v35 }
 0x152   :  { %1222 = vrsqrt.f32 %v380_v33  ;;  %v365_v22 = vmul.f32 0.0078125, %v349_v32 }
 0x153   :  { %v324_v17 = vpop.xlane.xlu1 %323  ;;  %1097 = vmatprep.mubr.msk.f32.mxu1 %vm51_vm0, %v518_v34  ;;  %1137 = vmatprep.mubr.msk.f32.mxu0 %vm51_vm0, %v454_v11  ;;  %v260_v38 = vpop.xlane.xlu0 %259  ;;  %v495_v53 = vmul.f32 %v1757_v44, %v471_v12  ;;  %v432_v1 = vmul.f32 %v1762_v45, %v409_v23 }
 0x154   :  { %v1219_v42 = vpop.eup %1218  ;;  %v381_v50 = vadd.f32 1e-05, %v365_v22  ;;  %v350_v51 = vadd.f32 %v324_v17, %v260_v38 }
 0x155   :  { %v519_v54 = vadd.f32 %v1769_v37, %v495_v53  ;;  %v455_v16 = vadd.f32 %v1774_v61, %v432_v1  ;;  %v472_v35 = vmul.f32 %v1219_v42, %v1588_v20  ;;  %v410_v55 = vmul.f32 %v1219_v42, %v1585_v47 }
 0x156   :  { %1224 = vrsqrt.f32 %v381_v50  ;;  %v366_v36 = vmul.f32 0.0078125, %v350_v51 }
 0x157   :  { %v327_v46 = vpop.xlane.xlu1 %326  ;;  %1098 = vmatmul.mubr.msk.f32.gmra.mrb[4].mxu1 %vm51_vm0, %v519_v54  ;;  %1138 = vmatmul.mubr.msk.f32.gmra.mrb[4].mxu0 %vm51_vm0, %v455_v16  ;;  %v263_v43 = vpop.xlane.xlu0 %262  ;;  %v496_v58 = vmul.f32 %v1757_v44, %v472_v35  ;;  %v433_v60 = vmul.f32 %v1762_v45, %v410_v55 }
 0x158   :  { %v1221_v8 = vpop.eup %1220  ;;  %v382_v27 = vadd.f32 1e-05, %v366_v36  ;;  %v351_v62 = vadd.f32 %v327_v46, %v263_v43 }
 0x159   :  { %v520_v26 = vadd.f32 %v1769_v37, %v496_v58  ;;  %v456_v20 = vadd.f32 %v1774_v61, %v433_v60  ;;  %v473_v47 = vmul.f32 %v1221_v8, %v1600_v24  ;;  %v411_v25 = vmul.f32 %v1221_v8, %v1597_v63 }
 0x15a   :  { %1226 = vrsqrt.f32 %v382_v27  ;;  %v367_v6 = vmul.f32 0.0078125, %v351_v62 }
 0x15b   :  { %v330_v13 = vpop.xlane.xlu1 %329  ;;  %1100 = vmatprep.mubr.msk.f32.mxu1 %vm51_vm0, %v520_v26  ;;  %1140 = vmatprep.mubr.msk.f32.mxu0 %vm51_vm0, %v456_v20  ;;  %v266_v14 = vpop.xlane.xlu0 %265  ;;  %v497_v9 = vmul.f32 %v1757_v44, %v473_v47  ;;  %v434_v59 = vmul.f32 %v1762_v45, %v411_v25 }
 0x15c   :  { %v1223_v29 = vpop.eup %1222  ;;  %v383_v18 = vadd.f32 1e-05, %v367_v6  ;;  %v352_v49 = vadd.f32 %v330_v13, %v266_v14 }
 0x15d   :  { %v521_v19 = vadd.f32 %v1769_v37, %v497_v9  ;;  %v457_v24 = vadd.f32 %v1774_v61, %v434_v59  ;;  %v474_v63 = vmul.f32 %v1223_v29, %v1612_v28  ;;  %v412_v48 = vmul.f32 %v1223_v29, %v1609_v15 }
 0x15e   :  { %1228 = vrsqrt.f32 %v383_v18  ;;  %v368_v30 = vmul.f32 0.0078125, %v352_v49 }
 0x15f   :  { %v333_v31 = vpop.xlane.xlu1 %332  ;;  %1101 = vmatmul.mubr.msk.f32.gmra.mrb[6].mxu1 %vm51_vm0, %v521_v19  ;;  %1141 = vmatmul.mubr.msk.f32.gmra.mrb[6].mxu0 %vm51_vm0, %v457_v24  ;;  %v269_v33 = vpop.xlane.xlu0 %268  ;;  %v498_v32 = vmul.f32 %v1757_v44, %v474_v63  ;;  %v435_v34 = vmul.f32 %v1762_v45, %v412_v48 }
 0x160   :  { %v1225_v11 = vpop.eup %1224  ;;  %v384_v12 = vadd.f32 1e-05, %v368_v30  ;;  %v353_v23 = vadd.f32 %v333_v31, %v269_v33 }
 0x161   :  { %v522_v22 = vadd.f32 %v1769_v37, %v498_v32  ;;  %v458_v28 = vadd.f32 %v1774_v61, %v435_v34  ;;  %v475_v15 = vmul.f32 %v1225_v11, %v1636_v21  ;;  %v413_v17 = vmul.f32 %v1225_v11, %v1633_v5 }
 0x162   :  { %1230 = vrsqrt.f32 %v384_v12  ;;  %v369_v38 = vmul.f32 0.0078125, %v353_v23 }
 0x163   :  { %v336_v53 = vpop.xlane.xlu1 %335  ;;  %1103 = vmatprep.mubr.msk.f32.mxu1 %vm51_vm0, %v522_v22  ;;  %1143 = vmatprep.mubr.msk.f32.mxu0 %vm51_vm0, %v458_v28  ;;  %v272_v1 = vpop.xlane.xlu0 %271  ;;  %v499_v42 = vmul.f32 %v1757_v44, %v475_v15  ;;  %v436_v50 = vmul.f32 %v1762_v45, %v413_v17 }
 0x164   :  { %v1227_v51 = vpop.eup %1226  ;;  %v385_v54 = vadd.f32 1e-05, %v369_v38  ;;  %v354_v16 = vadd.f32 %v336_v53, %v272_v1 }
 0x165   :  { %v523_v35 = vadd.f32 %v1769_v37, %v499_v42  ;;  %v459_v21 = vadd.f32 %v1774_v61, %v436_v50  ;;  %v476_v5 = vmul.f32 %v1227_v51, %v1660_v10  ;;  %v414_v55 = vmul.f32 %v1227_v51, %v1657_v7 }
 0x166   :  { %1232 = vrsqrt.f32 %v385_v54  ;;  %v370_v36 = vmul.f32 0.0078125, %v354_v16 }
 0x167   :  { %v339_v46 = vpop.xlane.xlu1 %338  ;;  %1104 = vmatmul.mubr.msk.f32.gmra.mrb[8].mxu1 %vm51_vm0, %v523_v35  ;;  %1144 = vmatmul.mubr.msk.f32.gmra.mrb[8].mxu0 %vm51_vm0, %v459_v21  ;;  %v275_v43 = vpop.xlane.xlu0 %274  ;;  %v500_v58 = vmul.f32 %v1757_v44, %v476_v5  ;;  %v437_v60 = vmul.f32 %v1762_v45, %v414_v55 }
 0x168   :  { %v1229_v8 = vpop.eup %1228  ;;  %v386_v27 = vadd.f32 1e-05, %v370_v36  ;;  %v355_v62 = vadd.f32 %v339_v46, %v275_v43 }
 0x169   :  { %v524_v26 = vadd.f32 %v1769_v37, %v500_v58  ;;  %v460_v10 = vadd.f32 %v1774_v61, %v437_v60  ;;  %v477_v7 = vmul.f32 %v1229_v8, %v1684_v39  ;;  %v415_v20 = vmul.f32 %v1229_v8, %v1681_v2 }
 0x16a   :  { %1234 = vrsqrt.f32 %v386_v27  ;;  %v371_v47 = vmul.f32 0.0078125, %v355_v62 }
 0x16b   :  { %1106 = vmatprep.mubr.msk.f32.mxu1 %vm51_vm0, %v524_v26  ;;  %1146 = vmatprep.mubr.msk.f32.mxu0 %vm51_vm0, %v460_v10  ;;  %v501_v25 = vmul.f32 %v1757_v44, %v477_v7  ;;  %v438_v6 = vmul.f32 %v1762_v45, %v415_v20 }
 0x16c   :  { %v1231_v13 = vpop.eup %1230  ;;  %v387_v14 = vadd.f32 1e-05, %v371_v47 }
 0x16d   :  { %v525_v9 = vadd.f32 %v1769_v37, %v501_v25  ;;  %v461_v59 = vadd.f32 %v1774_v61, %v438_v6  ;;  %v478_v39 = vmul.f32 %v1231_v13, %v1708_v4  ;;  %v416_v2 = vmul.f32 %v1231_v13, %v1705_v3 }
 0x16e   :  { %1236 = vrsqrt.f32 %v387_v14 }
 0x16f   :  { %1107 = vmatmul.mubr.msk.f32.gmra.mrb[10].mxu1 %vm51_vm0, %v525_v9  ;;  %1147 = vmatmul.mubr.msk.f32.gmra.mrb[10].mxu0 %vm51_vm0, %v461_v59  ;;  %v502_v29 = vmul.f32 %v1757_v44, %v478_v39  ;;  %v439_v18 = vmul.f32 %v1762_v45, %v416_v2 }
 0x170   :  { %v1233_v49 = vpop.eup %1232 }
 0x171   :  { %v526_v19 = vadd.f32 %v1769_v37, %v502_v29  ;;  %v462_v24 = vadd.f32 %v1774_v61, %v439_v18  ;;  %v479_v63 = vmul.f32 %v1233_v49, %v1720_v41  ;;  %v417_v4 = vmul.f32 %v1233_v49, %v1717_v40 }
 0x173   :  { %1109 = vmatprep.mubr.msk.f32.mxu1 %vm51_vm0, %v526_v19  ;;  %1149 = vmatprep.mubr.msk.f32.mxu0 %vm51_vm0, %v462_v24  ;;  %v503_v3 = vmul.f32 %v1757_v44, %v479_v63  ;;  %v440_v48 = vmul.f32 %v1762_v45, %v417_v4 }
 0x174   :  { %v1235_v30 = vpop.eup %1234 }
 0x175   :  { %v527_v31 = vadd.f32 %v1769_v37, %v503_v3  ;;  %v463_v33 = vadd.f32 %v1774_v61, %v440_v48  ;;  %v480_v32 = vmul.f32 %v1235_v30, %v1732_v52  ;;  %v418_v34 = vmul.f32 %v1235_v30, %v1729_v0 }
 0x177   :  { %1110 = vmatmul.mubr.msk.f32.gmra.mrb[12].mxu1 %vm51_vm0, %v527_v31  ;;  %1150 = vmatmul.mubr.msk.f32.gmra.mrb[12].mxu0 %vm51_vm0, %v463_v33  ;;  %v504_v40 = vmul.f32 %v1757_v44, %v480_v32  ;;  %v441_v41 = vmul.f32 %v1762_v45, %v418_v34 }
 0x178   :  { %v1237_v11 = vpop.eup %1236 }
 0x179   :  { %v528_v12 = vadd.f32 %v1769_v37, %v504_v40  ;;  %v464_v23 = vadd.f32 %v1774_v61, %v441_v41  ;;  %v481_v22 = vmul.f32 %v1237_v11, %v1744_v56  ;;  %v419_v28 = vmul.f32 %v1237_v11, %v1741_v57 }
 0x17b   :  { %1112 = vmatprep.mubr.msk.f32.mxu1 %vm51_vm0, %v528_v12  ;;  %1152 = vmatprep.mubr.msk.f32.mxu0 %vm51_vm0, %v464_v23  ;;  %v505_v0 = vmul.f32 %v1757_v44, %v481_v22  ;;  %v442_v52 = vmul.f32 %v1762_v45, %v419_v28 }
 0x17d   :  { %v529_v15 = vadd.f32 %v1769_v37, %v505_v0  ;;  %v465_v17 = vadd.f32 %v1774_v61, %v442_v52 }
 0x17f   :  { %1113 = vmatmul.mubr.msk.f32.gmra.mrb[14].mxu1 %vm51_vm0, %v529_v15  ;;  %1153 = vmatmul.mubr.msk.f32.gmra.mrb[14].mxu0 %vm51_vm0, %v465_v17 }
 0x21a   :  { %v1093_v38 = vpop.f32.mrb[0].mxu1  ;;  %v1133_v56 = vpop.f32.mrb[0].mxu0 }
 0x21b   :  { %v860_v53 = vadd.f32 %v1133_v56, %v1093_v38  ;;  %v661_v57 = vpop.f32.mrb[1].mxu1  ;;  %v854_v1 = vpop.f32.mrb[1].mxu0 }
 0x21c   :  { %v855_v42 = vadd.f32 %v854_v1, %v661_v57 }
 0x21d   :  { %934 = vst.msk [vmem:[#allocation2 + $0x8] sm:$0xff] %vm51_vm0, %v860_v53 }
 0x21e   :  { %933 = vst.msk [vmem:[#allocation2] sm:$0xff] %vm51_vm0, %v855_v42 }
 0x222   :  { %v1096_v44 = vpop.f32.mrb[2].mxu1  ;;  %v1136_v45 = vpop.f32.mrb[2].mxu0 }
 0x223   :  { %v870_v50 = vadd.f32 %v1136_v45, %v1096_v44  ;;  %v671_v37 = vpop.f32.mrb[3].mxu1  ;;  %v864_v51 = vpop.f32.mrb[3].mxu0 }
 0x224   :  { %v865_v61 = vadd.f32 %v864_v51, %v671_v37 }
 0x225   :  { %936 = vst.msk [vmem:[#allocation2 + $0x18] sm:$0xff] %vm51_vm0, %v870_v50 }
 0x226   :  { %935 = vst.msk [vmem:[#allocation2 + $0x10] sm:$0xff] %vm51_vm0, %v865_v61 }
 0x22a   :  { %v1099_v54 = vpop.f32.mrb[4].mxu1  ;;  %v1139_v16 = vpop.f32.mrb[4].mxu0 }
 0x22b   :  { %v880_v35 = vadd.f32 %v1139_v16, %v1099_v54  ;;  %v681_v21 = vpop.f32.mrb[5].mxu1  ;;  %v874_v5 = vpop.f32.mrb[5].mxu0 }
 0x22c   :  { %v875_v55 = vadd.f32 %v874_v5, %v681_v21 }
 0x22d   :  { %938 = vst.msk [vmem:[#allocation2 + $0x28] sm:$0xff] %vm51_vm0, %v880_v35 }
 0x22e   :  { %937 = vst.msk [vmem:[#allocation2 + $0x20] sm:$0xff] %vm51_vm0, %v875_v55 }
 0x232   :  { %v1102_v36 = vpop.f32.mrb[6].mxu1  ;;  %v1142_v46 = vpop.f32.mrb[6].mxu0 }
 0x233   :  { %v890_v43 = vadd.f32 %v1142_v46, %v1102_v36  ;;  %v691_v58 = vpop.f32.mrb[7].mxu1  ;;  %v884_v60 = vpop.f32.mrb[7].mxu0 }
 0x234   :  { %v885_v8 = vadd.f32 %v884_v60, %v691_v58 }
 0x235   :  { %940 = vst.msk [vmem:[#allocation2 + $0x38] sm:$0xff] %vm51_vm0, %v890_v43 }
 0x236   :  { %939 = vst.msk [vmem:[#allocation2 + $0x30] sm:$0xff] %vm51_vm0, %v885_v8 }
 0x23a   :  { %v1105_v27 = vpop.f32.mrb[8].mxu1  ;;  %v1145_v62 = vpop.f32.mrb[8].mxu0 }
 0x23b   :  { %v900_v26 = vadd.f32 %v1145_v62, %v1105_v27  ;;  %v701_v10 = vpop.f32.mrb[9].mxu1  ;;  %v894_v7 = vpop.f32.mrb[9].mxu0 }
 0x23c   :  { %v895_v20 = vadd.f32 %v894_v7, %v701_v10 }
 0x23d   :  { %942 = vst.msk [vmem:[#allocation2 + $0x48] sm:$0xff] %vm51_vm0, %v900_v26 }
 0x23e   :  { %941 = vst.msk [vmem:[#allocation2 + $0x40] sm:$0xff] %vm51_vm0, %v895_v20 }
 0x242   :  { %v1108_v47 = vpop.f32.mrb[10].mxu1  ;;  %v1148_v25 = vpop.f32.mrb[10].mxu0 }
 0x243   :  { %v910_v6 = vadd.f32 %v1148_v25, %v1108_v47  ;;  %v711_v13 = vpop.f32.mrb[11].mxu1  ;;  %v904_v14 = vpop.f32.mrb[11].mxu0 }
 0x244   :  { %v905_v9 = vadd.f32 %v904_v14, %v711_v13 }
 0x245   :  { %944 = vst.msk [vmem:[#allocation2 + $0x58] sm:$0xff] %vm51_vm0, %v910_v6 }
 0x246   :  { %943 = vst.msk [vmem:[#allocation2 + $0x50] sm:$0xff] %vm51_vm0, %v905_v9 }
 0x24a   :  { %v1111_v59 = vpop.f32.mrb[12].mxu1  ;;  %v1151_v39 = vpop.f32.mrb[12].mxu0 }
 0x24b   :  { %v920_v2 = vadd.f32 %v1151_v39, %v1111_v59  ;;  %v721_v29 = vpop.f32.mrb[13].mxu1  ;;  %v914_v18 = vpop.f32.mrb[13].mxu0 }
 0x24c   :  { %v915_v49 = vadd.f32 %v914_v18, %v721_v29 }
 0x24d   :  { %946 = vst.msk [vmem:[#allocation2 + $0x68] sm:$0xff] %vm51_vm0, %v920_v2 }
 0x24e   :  { %945 = vst.msk [vmem:[#allocation2 + $0x60] sm:$0xff] %vm51_vm0, %v915_v49 }
 0x252   :  { %v1114_v19 = vpop.f32.mrb[14].mxu1  ;;  %v1154_v24 = vpop.f32.mrb[14].mxu0 }
 0x253   :  { %v930_v63 = vadd.f32 %v1154_v24, %v1114_v19  ;;  %v731_v4 = vpop.f32.mrb[15].mxu1  ;;  %v924_v3 = vpop.f32.mrb[15].mxu0 }
 0x254   :  { %v925_v48 = vadd.f32 %v924_v3, %v731_v4 }
 0x255   :  { %948 = vst.msk [vmem:[#allocation2 + $0x78] sm:$0xff] %vm51_vm0, %v930_v63 }
 0x256   :  { %947 = vst.msk [vmem:[#allocation2 + $0x70] sm:$0xff] %vm51_vm0, %v925_v48 }
 0x257   :  { %1249 = shalt.err (!%p1246_p4)
}
 0x258   :  { %s1250_s15 = scalar_lea.hbm %s1934_s4, 2048 }
 0x259   :  { %p1251_p5 = scmp.ne.s32.totalorder %s1934_s4, %s1250_s15  ;;  %p1254_p6 = scmp.lt.u32.totalorder %s1250_s15, %s1934_s4 }
 0x25b   :  { %p1256_p7 = pnand %p1254_p6, %p1251_p5 }
 0x25d   :  { %1259 = shalt.err (!%p1256_p7)
}
 0x25e   :  { %s1263_s20 = smov 128   ;;  %s1264_s21 = smov 8  }
 0x25f   :  { %960 = dma.vmem_to_hbm [thread:$0]  %s955_s2, 2048, %s1934_s4, [#allocation3], %s1263_s20, %s1263_s20, %s1264_s21  }
 0x260   :  { %1260 = dma.done.wait [#allocation3], 2048  }
 0x261   :  { %1261 = vsyncadd [#allocation3], 4294965248 }
 0x262   :  { %964 = vsyncpa [#allocation3], 1 }

</bundles_post_ra>
